<compile_context>
chip_gen: v7x
topology: tpu7x:2x2x1
jax: 0.10.0
libtpu: 0.0.40
codegen_flags: <defaults>
</compile_context>

<pallas_src>
import math

import jax
import jax.numpy as jnp
from jax import lax
from jax.experimental import pallas as pl
from jax.experimental.pallas import tpu as pltpu


# ----------------------------- VMEM budgeting ------------------------------


def _vmem_budget_bytes():
    """Per-generation scoped-VMEM request (headroom left for compiler scratch)."""
    cap = None
    try:
        cap = getattr(pltpu.get_tpu_info(), "vmem_capacity_bytes", None)
    except Exception:
        cap = None
    if not cap:
        cap = 64 * 1024 * 1024          # conservative default: v7x physical VMEM
    return int(max(32 * 2**20, min(int(cap * 0.70), 96 * 2**20)))


# ------------------------------ tile helpers -------------------------------


def _pick_c_tile(C):
    if C <= 512:
        return C                         # full channel extent (always legal)
    for t in (512, 256, 128):
        if C % t == 0:
            return t
    return 256                           # ragged tail handled by the cdiv grid


def _pick_hw_tile(HW, c_tile, itemsize, max_block_bytes):
    max_hw = max(128, max_block_bytes // max(1, c_tile * itemsize))
    if HW <= max_hw:
        return HW                        # full extent (legal even if not 128-aligned)
    return max(128, (max_hw // 128) * 128)   # lane-dense; ragged tail masked in-kernel


# ----------------------------- Pallas kernels ------------------------------


def _make_fused_kernel(C, HW, k):
    """Single-pass pool -> channel conv -> sigmoid -> scale on a (1, C, HW) slab."""
    pad = (k - 1) // 2
    inv_hw = 1.0 / float(HW)

    def kernel(w_ref, x_ref, o_ref):
        # w_ref: (1, k) f32 scalar-prefetched into SMEM
        # x_ref / o_ref: (1, C, HW) blocks in VMEM
        x = x_ref[...]
        pooled = jnp.sum(x, axis=-1, keepdims=True, dtype=jnp.float32) * inv_hw  # (1,C,1)
        if pad > 0:
            z = jnp.zeros((1, pad, 1), jnp.float32)
            p = jnp.concatenate([z, pooled, z], axis=1)          # (1, C + 2*pad, 1)
        else:
            p = pooled
        conv = w_ref[0, 0] * p[:, 0:C, :]
        for j in range(1, k):                                    # k is tiny & static
            conv = conv + w_ref[0, j] * p[:, j:j + C, :]
        scale = jax.nn.sigmoid(conv)                             # (1, C, 1) f32 (EUP)
        o_ref[...] = (x.astype(jnp.float32) * scale).astype(o_ref.dtype)

    return kernel


def _make_pool_kernel(HW, hw_tile):
    """Accumulate f32 channel sums over lane-dense spatial tiles (cdiv + mask)."""
    ragged = (HW % hw_tile) != 0

    def kernel(x_ref, s_ref):
        @pl.when(pl.program_id(2) == 0)
        def _():
            s_ref[...] = jnp.zeros_like(s_ref)

        x = x_ref[...]
        if ragged:                                               # mask the HW tail only
            lane = lax.broadcasted_iota(jnp.int32, x.shape, 2)
            start = pl.program_id(2) * hw_tile
            x = jnp.where(start + lane < HW, x, jnp.zeros_like(x))
        s_ref[...] += jnp.sum(x, axis=-1, keepdims=True, dtype=jnp.float32)

    return kernel


def _scale_kernel(x_ref, s_ref, o_ref):
    # f32 math, single downcast (also avoids emulated bf16 VPU math on v5e).
    o_ref[...] = (x_ref[...].astype(jnp.float32) * s_ref[...]).astype(o_ref.dtype)


# --------------------- tiny channel conv (plain JAX) -----------------------


def _channel_conv_sigmoid(pooled, w):
    """pooled: (B, C) f32 channel means; w: (1, k) Conv1d(1,1,k,bias=False) weight."""
    _, C = pooled.shape
    k = w.shape[-1]
    pad = (k - 1) // 2
    p = jnp.pad(pooled.astype(jnp.float32), ((0, 0), (pad, pad)))
    out = jnp.zeros_like(pooled, dtype=jnp.float32)
    for j in range(k):                       # k is a small static int (1/3/5/...)
        out = out + w[0, j].astype(jnp.float32) * p[:, j:j + C]
    return jax.nn.sigmoid(out)


# ------------------------------- dispatchers --------------------------------


def _fused_forward(x3, w, budget):
    B, C, HW = x3.shape
    k = w.shape[-1]
    itemsize = jnp.dtype(x3.dtype).itemsize
    cost = pl.CostEstimate(
        flops=3 * B * C * HW + 2 * B * C * k,
        transcendentals=B * C,
        bytes_accessed=2 * B * C * HW * itemsize + int(w.size) * 4)
    return pl.pallas_call(
        _make_fused_kernel(C, HW, k),
        out_shape=jax.ShapeDtypeStruct((B, C, HW), x3.dtype),
        grid_spec=pltpu.PrefetchScalarGridSpec(
            num_scalar_prefetch=1,                   # conv weight -> SMEM scalars
            grid=(B,),
            in_specs=[pl.BlockSpec((1, C, HW), lambda b, w_ref: (b, 0, 0))],
            out_specs=pl.BlockSpec((1, C, HW), lambda b, w_ref: (b, 0, 0)),
        ),
        compiler_params=pltpu.CompilerParams(
            dimension_semantics=("parallel",),
            vmem_limit_bytes=budget),
        cost_estimate=cost,
    )(w, x3)


def _two_pass_forward(x3, w, budget, max_block_bytes=None):
    B, C, HW = x3.shape
    itemsize = jnp.dtype(x3.dtype).itemsize

    if max_block_bytes is None:
        max_block_bytes = min(4 * 2**20, budget // 8)
    c_tile = _pick_c_tile(C)
    # Ensure >= 2 independent "parallel" steps so both TensorCores (v7x) get work.
    if B * pl.cdiv(C, c_tile) < 2 and C > 8:
        c_tile = max(8, ((c_tile // 2 + 7) // 8) * 8)
    hw_tile = _pick_hw_tile(HW, c_tile, itemsize, max_block_bytes)
    num_c = pl.cdiv(C, c_tile)
    num_hw = pl.cdiv(HW, hw_tile)

    # ---- pass 1: global-average-pool sums (reduction axis last) ----
    pool_cost = pl.CostEstimate(
        flops=B * C * HW, transcendentals=0,
        bytes_accessed=B * C * HW * itemsize + B * C * 4)
    sums = pl.pallas_call(
        _make_pool_kernel(HW, hw_tile),
        out_shape=jax.ShapeDtypeStruct((B, C, 1), jnp.float32),
        grid_spec=pltpu.PrefetchScalarGridSpec(
            num_scalar_prefetch=0,
            grid=(B, num_c, num_hw),
            in_specs=[pl.BlockSpec((1, c_tile, hw_tile), lambda b, c, h: (b, c, h))],
            out_specs=pl.BlockSpec((1, c_tile, 1), lambda b, c, h: (b, c, 0)),
        ),
        compiler_params=pltpu.CompilerParams(
            dimension_semantics=("parallel", "parallel", "arbitrary"),
            vmem_limit_bytes=budget),
        cost_estimate=pool_cost,
    )(x3)

    # ---- tiny O(B*C): mean -> 1-D channel conv -> sigmoid (plain JAX) ----
    pooled = sums[:, :, 0] * (1.0 / float(HW))                # (B, C) f32
    scale = _channel_conv_sigmoid(pooled, w)[:, :, None]      # (B, C, 1) f32

    # ---- pass 2: lane-dense per-channel scaling ----
    scale_cost = pl.CostEstimate(
        flops=2 * B * C * HW, transcendentals=0,
        bytes_accessed=2 * B * C * HW * itemsize + B * C * 4)
    out3 = pl.pallas_call(
        _scale_kernel,
        out_shape=jax.ShapeDtypeStruct((B, C, HW), x3.dtype),
        grid_spec=pltpu.PrefetchScalarGridSpec(
            num_scalar_prefetch=0,
            grid=(B, num_c, num_hw),
            in_specs=[
                pl.BlockSpec((1, c_tile, hw_tile), lambda b, c, h: (b, c, h)),
                pl.BlockSpec((1, c_tile, 1), lambda b, c, h: (b, c, 0)),
            ],
            out_specs=pl.BlockSpec((1, c_tile, hw_tile), lambda b, c, h: (b, c, h)),
        ),
        compiler_params=pltpu.CompilerParams(
            dimension_semantics=("parallel", "parallel", "parallel"),
            vmem_limit_bytes=budget),
        cost_estimate=scale_cost,
    )(x3, scale)
    return out3


# -------------------------------- forward ----------------------------------


def eca_forward(x, w, *, force_unfused=False, max_block_bytes=None):
    """ECANet forward. x: (B, C, H, W); w: (1, k) Conv1d(1,1,k,bias=False) weight."""
    B, C, H, W = x.shape
    HW = H * W
    x3 = x.reshape(B, C, HW)                    # free: contiguous in NCHW
    w = jnp.asarray(w, dtype=jnp.float32)

    budget = _vmem_budget_bytes()
    itemsize = jnp.dtype(x.dtype).itemsize
    slab = C * HW * itemsize                    # per-image input slab
    slab_f32 = C * HW * 4
    # fused working set: 2x double-buffered in + 2x out + ~3 f32-slab temporaries
    fused_ws = 4 * slab + 3 * slab_f32

    if (not force_unfused) and fused_ws <= budget:
        out3 = _fused_forward(x3, w, budget)
    else:
        out3 = _two_pass_forward(x3, w, budget, max_block_bytes)
    return out3.reshape(B, C, H, W)


# ------------------------------ reference ----------------------------------


def _eca_kernel_size(in_channels, gamma=2, b=1):
    ks = int(abs((math.log(in_channels, 2) + b) / gamma))
    return ks if ks % 2 else ks + 1


def _reference(x, w):
    """Pure-JAX reference matching the PyTorch forward (independent conv impl)."""
    k = w.shape[-1]
    pad = (k - 1) // 2
    xf = x.astype(jnp.float32)
    pooled = jnp.mean(xf, axis=(2, 3))                            # (B, C)
    conv = lax.conv_general_dilated(
        pooled[:, None, :],                                       # (B, 1, C)
        w.reshape(1, 1, k).astype(jnp.float32),                   # (O, I, k)
        window_strides=(1,), padding=[(pad, pad)],
        dimension_numbers=("NCH", "OIH", "NCH"),
        precision=lax.Precision.HIGHEST)                          # (B, 1, C)
    scale = jax.nn.sigmoid(conv[:, 0, :])                         # (B, C)
    return (xf * scale[:, :, None, None]).astype(x.dtype)


if __name__ == "__main__":
    key = jax.random.PRNGKey(0)
    k1, k2, k3, k4 = jax.random.split(key, 4)

    def make_weight(C, kkey):
        # Conv1d(1, 1, k, bias=False) weight; PyTorch kaiming-uniform bound 1/sqrt(k).
        k = _eca_kernel_size(C)
        bound = 1.0 / math.sqrt(k)
        return jax.random.uniform(kkey, (1, k), minval=-bound, maxval=bound,
                                  dtype=jnp.float32)

    # ---- case 1: fused single-pass path, f32 ----
    B, C, H, W = 2, 16, 16, 16
    x = jax.random.normal(k1, (B, C, H, W), dtype=jnp.float32)
    w = make_weight(C, k2)                                        # k = 3 for C = 16
    out = jax.block_until_ready(eca_forward(x, w))
    ref = _reference(x, w)
    assert out.shape == x.shape and out.dtype == x.dtype
    assert jnp.allclose(out, ref, atol=1e-5, rtol=1e-5)

    # ---- case 2: two-pass fallback with ragged HW tiles (cdiv grid + lane mask) ----
    B2, C2, H2, W2 = 2, 24, 15, 15                                # HW=225, not 128-aligned
    x2 = jax.random.normal(k3, (B2, C2, H2, W2), dtype=jnp.float32)
    w2 = make_weight(C2, k4)
    out2 = jax.block_until_ready(
        eca_forward(x2, w2, force_unfused=True, max_block_bytes=C2 * 128 * 4))
    ref2 = _reference(x2, w2)
    assert jnp.allclose(out2, ref2, atol=1e-5, rtol=1e-5)

    # ---- case 3: fused path, bf16 input ----
    xb = x.astype(jnp.bfloat16)
    outb = jax.block_until_ready(eca_forward(xb, w))
    refb = _reference(xb, w)
    assert outb.dtype == jnp.bfloat16
    assert jnp.allclose(outb.astype(jnp.float32), refb.astype(jnp.float32),
                        atol=5e-2, rtol=5e-2)

    print("KERNEL_OK")
</pallas_src>

<mosaic_0001>
module attributes {stable_mosaic.version = 11 : i64} {
  func.func @kernel(%arg0: i32, %arg1: memref<1x3xf32, #tpu.memory_space<smem>>, %arg2: memref<1x16x256xf32, #tpu.memory_space<vmem>>, %arg3: memref<1x16x256xf32, #tpu.memory_space<vmem>>) attributes {dimension_semantics = [#tpu.dimension_semantics<parallel>], iteration_bounds = array<i64: 2>, scalar_prefetch = 1 : i64, scratch_operands = 0 : i64, tpu.core_type = #tpu.core_type<tc>, window_params = [{transform_indices = @transform_0, window_bounds = array<i64: 1, 16, 256>}, {transform_indices = @transform_1, window_bounds = array<i64: 1, 16, 256>}]} {
    %c0 = arith.constant 0 : index
    %c0_0 = arith.constant 0 : index
    %c0_1 = arith.constant 0 : index
    %0 = vector.load %arg2[%c0, %c0_0, %c0_1] : memref<1x16x256xf32, #tpu.memory_space<vmem>>, vector<1x16x256xf32>
    %cst = arith.constant dense<0.000000e+00> : vector<1x16xf32>
    %1 = vector.multi_reduction <add>, %0, %cst [2] : vector<1x16x256xf32> to vector<1x16xf32>
    %2 = vector.shape_cast %1 : vector<1x16xf32> to vector<1x16x1xf32>
    %cst_2 = arith.constant 3.906250e-03 : f32
    %3 = vector.broadcast %cst_2 : f32 to vector<1x16x1xf32>
    %4 = arith.mulf %2, %3 : vector<1x16x1xf32>
    %cst_3 = arith.constant 0.000000e+00 : f32
    %5 = vector.broadcast %cst_3 : f32 to vector<1x1x1xf32>
    %6 = tpu.concatenate %5, %4, %5 in 1 : vector<1x1x1xf32>, vector<1x16x1xf32>, vector<1x1x1xf32> -> vector<1x18x1xf32>
    %c0_4 = arith.constant 0 : index
    %c0_5 = arith.constant 0 : index
    %7 = memref.load %arg1[%c0_4, %c0_5] : memref<1x3xf32, #tpu.memory_space<smem>>
    %8 = vector.extract_strided_slice %6 {offsets = [0, 0, 0], sizes = [1, 16, 1], strides = [1, 1, 1]} : vector<1x18x1xf32> to vector<1x16x1xf32>
    %9 = vector.broadcast %7 : f32 to vector<1x16x1xf32>
    %10 = arith.mulf %9, %8 : vector<1x16x1xf32>
    %c0_6 = arith.constant 0 : index
    %c1 = arith.constant 1 : index
    %11 = memref.load %arg1[%c0_6, %c1] : memref<1x3xf32, #tpu.memory_space<smem>>
    %12 = vector.extract_strided_slice %6 {offsets = [0, 1, 0], sizes = [1, 16, 1], strides = [1, 1, 1]} : vector<1x18x1xf32> to vector<1x16x1xf32>
    %13 = vector.broadcast %11 : f32 to vector<1x16x1xf32>
    %14 = arith.mulf %13, %12 : vector<1x16x1xf32>
    %15 = arith.addf %10, %14 : vector<1x16x1xf32>
    %c0_7 = arith.constant 0 : index
    %c2 = arith.constant 2 : index
    %16 = memref.load %arg1[%c0_7, %c2] : memref<1x3xf32, #tpu.memory_space<smem>>
    %17 = vector.extract_strided_slice %6 {offsets = [0, 2, 0], sizes = [1, 16, 1], strides = [1, 1, 1]} : vector<1x18x1xf32> to vector<1x16x1xf32>
    %18 = vector.broadcast %16 : f32 to vector<1x16x1xf32>
    %19 = arith.mulf %18, %17 : vector<1x16x1xf32>
    %20 = arith.addf %15, %19 : vector<1x16x1xf32>
    %21 = arith.negf %20 : vector<1x16x1xf32>
    %22 = math.exp %21 : vector<1x16x1xf32>
    %cst_8 = arith.constant 1.000000e+00 : f32
    %23 = vector.broadcast %cst_8 : f32 to vector<1x16x1xf32>
    %24 = arith.addf %23, %22 : vector<1x16x1xf32>
    %25 = arith.divf %23, %24 : vector<1x16x1xf32>
    %26 = vector.broadcast %25 : vector<1x16x1xf32> to vector<1x16x256xf32>
    %27 = arith.mulf %0, %26 : vector<1x16x256xf32>
    %c0_9 = arith.constant 0 : index
    %c0_10 = arith.constant 0 : index
    %c0_11 = arith.constant 0 : index
    %28 = vector.load %arg3[%c0_9, %c0_10, %c0_11] : memref<1x16x256xf32, #tpu.memory_space<vmem>>, vector<1x16x256xf32>
    tpu.vector_store %arg3[%c0_9, %c0_10, %c0_11], %27 {strides = array<i32>} : memref<1x16x256xf32, #tpu.memory_space<vmem>>, vector<1x16x256xf32>,
    return
  }
  func.func @transform_0(%arg0: i32, %arg1: memref<1x3xf32, #tpu.memory_space<smem>>) -> (i32, i32, i32) {
    %c0_i32 = arith.constant 0 : i32
    %c0_i32_0 = arith.constant 0 : i32
    %c0_i32_1 = arith.constant 0 : i32
    return %arg0, %c0_i32, %c0_i32_0 : i32, i32, i32
  }
  func.func @transform_1(%arg0: i32, %arg1: memref<1x3xf32, #tpu.memory_space<smem>>) -> (i32, i32, i32) {
    %c0_i32 = arith.constant 0 : i32
    %c0_i32_0 = arith.constant 0 : i32
    %c0_i32_1 = arith.constant 0 : i32
    return %arg0, %c0_i32, %c0_i32_0 : i32, i32, i32
  }
}

</mosaic_0001>

<bundles_post_ra>
// kernel: tpu_custom_call.1
= control target key start
LH: loop header
LB: loop body
LE: loop exit
PB: predicated region body
PF: predicated region fallthrough
CT: control target
= control target key end

     0   :  { %s729_s0 = inlined_call_operand.hbm [shape: f32[1,3], index: 0, kind: input, shape index: {}]   ;;  %s730_s1 = inlined_call_operand.hbm [shape: f32[2,16,256], index: 1, kind: input, shape index: {}]   ;;  %s731_s2 = inlined_call_operand.hbm [shape: f32[2,16,256], index: 2, kind: output, shape index: {}]  }
   0x1   :  { %s402_s11 = scalar_lea.hbm %s729_s0, 16 }
   0x2   :  { %p403_p0 = scmp.ne.s32.totalorder %s729_s0, %s402_s11  ;;  %p406_p1 = scmp.lt.u32.totalorder %s402_s11, %s729_s0 }
   0x4   :  { %p408_p2 = pnand %p406_p1, %p403_p0 }
   0x6   :  { %411 = shalt.err (!%p408_p2)  }
   0x7   :  { %s512_s16 = smov [#allocation3]  }
   0x8   :  { %8 = dma.hbm_to_smem %s729_s0, 16, %s512_s16, [#allocation2] }
   0x9   :  { %486 = dma.done.wait [#allocation2], 16 }
   0xa   :  { %487 = vsyncadd [#allocation2], 4294967280 }
   0xb   :  { %10 = sfence }
   0xc   :  { %11 = vsyncpa [#allocation5], 0 }
   0xd   :  { %13 = vsyncpa [#allocation5 + $0x1], 0 }
   0xe   :  { %14 = vsyncpa [#allocation6], 0 }
   0xf   :  { %16 = vsyncpa [#allocation6 + $0x1], 0  ;;  %s547_s19 = smov 0   ;;  %s549_s20 = smov 0  }
  0x10   :  { %s551_s21 = smov 0   ;;  %s553_s22 = smov 0  }
  0x11 LB: > { %s568_s0 = sadd.s32 4294967295, %s510_s22   ;;  %s320_s23 = sadd.s32 4294967294, %s510_s22   ;;  %s510_s22 = sphi %s553_s22, %s744_s22   ;;  %s506_s21 = sphi %s551_s21, %s743_s21   ;;  %s502_s20 = sphi %s549_s20, %s742_s20   ;;  %s498_s19 = sphi %s547_s19, %s741_s19  }
  0x12   : > { %s572_s24 = sadd.s32 1, %s510_s22   ;;  %s29_s25 = sadd.s32 1, %s506_s21 }
  0x13   : > { %s26_s26 = ssub.s32 %s510_s22, %s572_s24  ;;  %p36_p3 = scmp.ne.s32.totalorder %s506_s21, %s502_s20 }
  0x14   : > { %p27_p4 = scmp.eq.s32.totalorder %s26_s26, 0  ;;  %p37_p5 = scmp.eq.s32.totalorder %s510_s22, 0 }
  0x15   : > { %p42_p6 = scmp.ne.s32.totalorder %s502_s20, %s498_s19  ;;  %p43_p7 = scmp.eq.s32.totalorder %s568_s0, 0 }
  0x16   : > { %s584_s27 = scalar_select %p27_p4, %s506_s21, %s29_s25  }
  0x17   : > { %p586_p8 = por %p37_p5, %p36_p3  ;;  %p590_p9 = por %p43_p7, %p42_p6 }
  0x18   : > { %p66_p10 = scmp.eq.s32.totalorder %s568_s0, 1  ;;  %p72_p11 = scmp.eq.s32.totalorder %s320_s23, 1 }
  0x19   : > { %p352_p13 = scmp.lt.s32.totalorder %s510_s22, 2  ;;  %s92_s4 = sand.u32 1, %s506_s21  }
  0x1a   : > { %p597_p0 = por %p66_p10, %p36_p3  ;;  %p601_p1 = por %p72_p11, %p42_p6 }
  0x1b   : > { %s338_s5 = sshll.u32 %s510_s22, 9  ;;  %s323_s6 = sshll.u32 %s92_s4, 5 }
  0x1c   : > { %s735_s30 = scalar_select %p597_p0, 1, 0 }
  0x1d   : > { %s736_s3 = scalar_select %p601_p1, 1, 0 }
  0x1e   : > { %s610_s9 = scalar_lea.hbm %s730_s1, %s338_s5  ;;  %s96_s10 = scalar_lea.vmem [#allocation4], %s323_s6 }
  0x1f   : > { %s103_s11 = sshll.u32 %s96_s10, 4  ;;  %p614_p2 = pnand %p352_p13, %p586_p8  ;;  %s618_s11 = int_to_ptr.vmem [resolvable:$true] %s103_s11 }
  0x20   : > { %s620_s13 = scalar_lea.sflag [#allocation5], %s92_s4  ;;  %s412_s14 = scalar_lea.hbm %s610_s9, 512 }
  0x21   : > { %p413_p3 = scmp.ne.s32.totalorder %s610_s9, %s412_s14  ;;  %p414_p4 = pneg %p614_p2 }
  0x22   : > { %s417_s17 = scalar_lea.hbm %s730_s1, 1024  ;;  %p418_p7 = scmp.lt.u32.totalorder %s610_s9, %s730_s1 }
  0x23   : > { %p415_p5 = pnand %p414_p4, %p413_p3  ;;  %p419_p8 = scmp.lt.u32.totalorder %s417_s17, %s412_s14 }
  0x24   : > { %p421_p11 = scmp.lt.u32.totalorder %s412_s14, %s610_s9 }
  0x25   : > { %p416_p6 = pneg %p415_p5  ;;  %p420_p10 = por %p419_p8, %p418_p7 }
  0x27   : > { %p422_p13 = por %p421_p11, %p420_p10 }
  0x29   : > { %p423_p12 = pnand %p422_p13, %p416_p6 }
  0x2b   : > { %426 = shalt.err (!%p423_p12)
}
  0x2c   : > { %s427_s25 = scalar_lea.vmem %s618_s11, 512  ;;  %s513_s26 = smov [#allocation4]  }
  0x2d   : > { %p428_p3 = scmp.ne.s32.totalorder %s618_s11, %s427_s25  ;;  %s432_s28 = sshll.u32 %s513_s26, 4  ;;  %s433_s28 = int_to_ptr.vmem [resolvable:$false] %s432_s28 }
  0x2e   : > { %s434_s4 = scalar_lea.vmem %s433_s28, 1024  ;;  %p435_p0 = scmp.lt.s32.totalorder %s618_s11, %s433_s28 }
  0x2f   : > { %p430_p5 = pnand %p428_p3, %p414_p4  ;;  %p436_p7 = scmp.lt.s32.totalorder %s434_s4, %s427_s25 }
  0x31   : > { %p431_p1 = pneg %p430_p5  ;;  %p437_p8 = por %p436_p7, %p435_p0 }
  0x33   : > { %p438_p10 = pnand %p437_p8, %p431_p1 }
  0x35   : > { %441 = shalt.err (!%p438_p10)
}
  0x36   : > { %s514_s5 = smov 256   ;;  %s515_s6 = smov 16  }
  0x37   : > { %347 = dma.hbm_to_vmem [thread:$0]  (!%p614_p2), %s610_s9, 512, %s618_s11, %s620_s13, %s514_s5, %s514_s5, %s515_s6  }
  0x38   : > { %p326_p12 = scmp.ge.s32.totalorder %s510_s22, 1  ;;  %p111_p4 = scmp.lt.s32.totalorder %s510_s22, 3 }
  0x3a   : > { %p112_p6 = pnand %p326_p12, %p111_p4 }
  0x3b   : > { %s651_s7 = sand.u32 (!%p112_p6), 1, %s502_s20  }
  0x3c   : > { %115 = sbr.rel (%p112_p6) target bundleno = 407 (0x197), region = 24  ;;  %s327_s8 = sshll.u32 (!%p112_p6), %s651_s7, 5 }
  0x3d   : > { %s118_s10 = scalar_lea.sflag (!%p112_p6), [#allocation5], %s651_s7  ;;  %s121_s14 = scalar_lea.vmem (!%p112_p6), [#allocation4], %s327_s8 }
  0x43   : > { %489 = dma.done.wait (%p590_p9), %s118_s10, 512  }
  0x44   : > { %491 = vsyncadd (%p590_p9), %s118_s10, 4294966784  ;;  %v661_v0 = vld [vmem:[%s121_s14] sm:$0xff]  ;;  %v663_v1 = vld [vmem:[%s121_s14 + $0x8] sm:$0xff]  ;;  %v516_v6 = vmov 0   ;;  %s329_s29 = sld [smem:[#allocation3 + $0x1]]  ;;  %s330_s9 = sld [smem:[#allocation3 + $0x2]] }
  0x45   : > { %v665_v2 = vld [vmem:[%s121_s14 + $0x10] sm:$0xff]  ;;  %v144_v3 = vadd.f32 %v663_v1, %v661_v0  ;;  %v669_v4 = vld [vmem:[%s121_s14 + $0x18] sm:$0xff]  ;;  %392 = vset.pattern.permute.xlu1 %v516_v6  ;;  %393 = vset.pattern.permute.xlu0 %v516_v6  ;;  %s163_s11 = sld [smem:[#allocation3]]  ;;  %vm154_vm0 = vcmask 1040384   ;;  %vm175_vm1 = vcmask 1046528   ;;  %vm193_vm2 = vcmask 1045504  }
  0x46   : > { %v147_v5 = vadd.f32 %v669_v4, %v665_v2  ;;  %s139_s12 = scalar_lea.vmem [#allocation7], %s327_s8  ;;  %s339_s15 = sshll.u32 %s568_s0, 9 }
  0x47   : > { %145 = vadd.xlane.f32.xlu0 %v144_v3  ;;  %s247_s13 = sshll.u32 %s139_s12, 4  ;;  %s683_s18 = scalar_lea.hbm %s731_s2, %s339_s15  ;;  %s678_s13 = int_to_ptr.vmem [resolvable:$true] %s247_s13 }
  0x48   : > { %s234_s0 = scalar_lea.sflag [#allocation6], %s651_s7  ;;  %s442_s23 = scalar_lea.vmem %s678_s13, 512 }
  0x49   : > { %p443_p9 = scmp.ne.s32.totalorder %s678_s13, %s442_s23  ;;  %p738_p0 = scmp.ne.s32.totalorder %s735_s30, 0 }
  0x4a   : > { %v168_v11 = vstv %s329_s29  ;;  %v186_v14 = vstv %s330_s9  ;;  %s517_s25 = smov [#allocation7]  }
  0x4b   : > { %148 = vadd.xlane.f32.xlu0 %v147_v5  ;;  %v164_v17 = vstv %s163_s11  ;;  %p444_p1 = pnand %p443_p9, %p738_p0  ;;  %s446_s26 = sshll.u32 %s517_s25, 4  ;;  %s447_s26 = int_to_ptr.vmem [resolvable:$false] %s446_s26 }
  0x4c   : > { %s448_s28 = scalar_lea.vmem %s447_s26, 1024  ;;  %p449_p11 = scmp.lt.s32.totalorder %s678_s13, %s447_s26 }
  0x4d   : > { %p445_p2 = pneg %p444_p1  ;;  %p450_p13 = scmp.lt.s32.totalorder %s448_s28, %s442_s23 }
  0x4f   : > { %p451_p3 = por %p450_p13, %p449_p11 }
  0x51   : > { %p452_p5 = pnand %p451_p3, %p445_p2 }
  0xd4   : > { %v146_v7 = vpop.xlane.xlu0 %145 }
  0xd5   : > { %v150_v8 = vmul.f32 0.00390625, %v146_v7 }
  0xd7   : > { %v155_v9 = vrot.slane %v150_v8, 7 }
  0xd8   : > { %v149_v10 = vpop.xlane.xlu0 %148 }
  0xd9   : > { %v161_v12 = vsel %vm154_vm0, 0.0, %v155_v9  ;;  %v151_v13 = vmul.f32 0.00390625, %v149_v10 }
  0xda   : > { %v169_v16 = vmul.f32 %v168_v11, %v161_v12  ;;  %v187_v20 = vmul.f32 %v186_v14, %v161_v12  ;;  %v165_v29 = vmul.f32 %v164_v17, %v161_v12 }
  0xdb   : > { %v156_v15 = vrot.slane %v151_v13, 7 }
  0xdc   : > { %v176_v25 = vrot.slane %v169_v16, 1  ;;  %v194_v32 = vrot.slane %v187_v20, 2 }
  0xdd   : > { %v157_v18 = vsel %vm154_vm0, %v155_v9, %v156_v15  ;;  %v162_v19 = vsel %vm154_vm0, %v156_v15, 0.0 }
  0xde   : > { %v170_v21 = vmul.f32 %v168_v11, %v157_v18  ;;  %v171_v22 = vmul.f32 %v168_v11, %v162_v19  ;;  %v188_v23 = vmul.f32 %v186_v14, %v157_v18  ;;  %v189_v24 = vmul.f32 %v186_v14, %v162_v19 }
  0xdf   : > { %v166_v30 = vmul.f32 %v164_v17, %v157_v18 }
  0xe0   : > { %v177_v26 = vrot.slane %v170_v21, 1  ;;  %v179_v27 = vrot.slane %v171_v22, 1  ;;  %v195_v28 = vrot.slane %v188_v23, 2  ;;  %v197_v31 = vrot.slane %v189_v24, 2 }
  0xe2   : > { %v178_v33 = vsel %vm175_vm1, %v176_v25, %v177_v26  ;;  %v180_v34 = vsel %vm175_vm1, %v177_v26, %v179_v27  ;;  %v196_v37 = vsel %vm193_vm2, %v194_v32, %v195_v28  ;;  %v198_v38 = vsel %vm193_vm2, %v195_v28, %v197_v31 }
  0xe3   : > { %v183_v35 = vadd.f32 %v178_v33, %v165_v29  ;;  %v184_v36 = vadd.f32 %v180_v34, %v166_v30 }
  0xe5   : > { %v201_v39 = vadd.f32 %v196_v37, %v183_v35  ;;  %v202_v40 = vadd.f32 %v198_v38, %v184_v36 }
  0xe7   : > { %v331_v41 = vmul.f32 -1.442695, %v201_v39  ;;  %v332_v42 = vmul.f32 -1.442695, %v202_v40 }
  0xe9   : > { %394 = vpow2.f32 %v332_v42 }
  0xea   : > { %396 = vpow2.f32 %v331_v41 }
  0xf3   : > { %v395_v43 = vpop.eup %394 }
  0xf4   : > { %v397_v44 = vpop.eup %396  ;;  %v210_v46 = vadd.f32 1.0, %v395_v43 }
  0xf5   : > { %v209_v45 = vadd.f32 1.0, %v397_v44 }
  0xf7   : > { %398 = vrcp.f32 %v209_v45 }
  0xf8   : > { %400 = vrcp.f32 %v210_v46 }
 0x101   : > { %v399_v47 = vpop.eup %398 }
 0x102   : > { %217 = vperm.xlu1 %392, %v399_v47   ;;  %v401_v48 = vpop.eup %400 }
 0x106   : > { %222 = vperm.xlu1 %392, %v401_v48  }
 0x181   : > { %v218_v49 = vpop.permute.xlu1 %217 }
 0x182   : > { %v225_v50 = vmul.f32 %v218_v49, %v661_v0  ;;  %v226_v51 = vmul.f32 %v218_v49, %v663_v1 }
 0x184   : > { %229 = vst [vmem:[%s139_s12] sm:$0xff] %v225_v50  ;;  %230 = vst [vmem:[%s139_s12 + $0x8] sm:$0xff] %v226_v51 }
 0x185   : > { %v223_v52 = vpop.permute.xlu1 %222 }
 0x186   : > { %v227_v53 = vmul.f32 %v223_v52, %v665_v2  ;;  %v228_v54 = vmul.f32 %v223_v52, %v669_v4 }
 0x188   : > { %231 = vst [vmem:[%s139_s12 + $0x10] sm:$0xff] %v227_v53  ;;  %232 = vst [vmem:[%s139_s12 + $0x18] sm:$0xff] %v228_v54 }
 0x189   : > { %455 = shalt.err (!%p452_p5)
}
 0x18a   : > { %s456_s4 = scalar_lea.hbm %s683_s18, 512  ;;  %s460_s8 = scalar_lea.hbm %s731_s2, 1024 }
 0x18b   : > { %p457_p7 = scmp.ne.s32.totalorder %s683_s18, %s456_s4  ;;  %p461_p12 = scmp.lt.u32.totalorder %s683_s18, %s731_s2 }
 0x18c   : > { %p462_p4 = scmp.lt.u32.totalorder %s460_s8, %s456_s4  ;;  %p464_p9 = scmp.lt.u32.totalorder %s456_s4, %s683_s18 }
 0x18d   : > { %p458_p8 = pnand %p457_p7, %p738_p0 }
 0x18e   : > { %p463_p6 = por %p462_p4, %p461_p12 }
 0x18f   : > { %p459_p10 = pneg %p458_p8 }
 0x190   : > { %p465_p1 = por %p464_p9, %p463_p6 }
 0x192   : > { %p466_p2 = pnand %p465_p1, %p459_p10 }
 0x194   : > { %469 = shalt.err (!%p466_p2)
}
 0x195   : > { %s518_s29 = smov 256   ;;  %s519_s9 = smov 16  }
 0x196   : > { %342 = dma.vmem_to_hbm [thread:$0]  (%p738_p0), %s678_s13, 512, %s683_s18, %s234_s0, %s518_s29, %s518_s29, %s519_s9  }
 0x197 PF: > { %s262_s11 = sand.u32 1, %s498_s19   ;;  %p739_p11 = scmp.ne.s32.totalorder %s736_s3, 0 }
 0x198   : > { %p740_p13 = scmp.ge.s32.totalorder %s510_s22, 2  ;;  %s263_s12 = scalar_lea.sflag [#allocation6], %s262_s11 }
 0x19a   : > { %p349_p3 = pnand %p740_p13, %p739_p11 }
 0x19c   : > { %493 = dma.done.wait (!%p349_p3), %s263_s12, 512  }
 0x19d   : > { %495 = vsyncadd (!%p349_p3), %s263_s12, 4294966784  ;;  %p19_p5 = scmp.ge.s32.totalorder %s572_s24, 4   ;;  %s741_s19 = smov %s502_s20 }
 0x19e   : > { %s742_s20 = smov %s506_s21  ;;  %s743_s21 = smov %s584_s27 }
 0x19f   : > { %s744_s22 = smov %s572_s24  ;;  %21 = sbr.rel (!%p19_p5) target bundleno = 17 (0x11), region = 69 }
 0x1a6   :  { %268 = vsyncpa [#allocation5], 1 }
 0x1a7   :  { %270 = vsyncpa [#allocation5 + $0x1], 1 }
 0x1a8   :  { %271 = vsyncpa [#allocation6], 1 }
 0x1a9   :  { %273 = vsyncpa [#allocation6 + $0x1], 1 }

</bundles_post_ra>
